<compile_context>
chip_gen: v5e
topology: v5e:2x2
jax: 0.10.0
libtpu: 0.0.40
codegen_flags: <defaults>
</compile_context>

<pallas_src>
import jax
import jax.numpy as jnp
from jax.experimental import pallas as pl
from jax.experimental.pallas import tpu as pltpu


def basic_block_kernel(x_ref, m1_ref, b1_ref, m2_ref, b2_ref, o_ref):
    # x_ref  : (1, H, W*C)    lane-dense input (also the residual identity)
    # m1_ref : (3, W*C, W*C)  banded conv1 weights (BN1 scale folded), per row tap dy
    # b1_ref : (1, W*C)       folded BN1 bias, tiled per lane
    # m2_ref : (3, W*C, W*C)  banded conv2 weights (BN2 scale folded)
    # b2_ref : (1, W*C)       folded BN2 bias
    # o_ref  : (1, H, W*C)
    H = x_ref.shape[1]
    x = x_ref[0]                                   # (H, W*C), f32

    # H-boundary masks for the row shifts (zero padding along H), hoisted so
    # the iota/compares are built once and shared by both convs.
    row = jax.lax.broadcasted_iota(jnp.int32, x.shape, 0)
    not_top = row != 0
    not_bot = row != H - 1

    def conv3x3(a, m_ref):
        # Row shifts (dy = 0 and dy = 2) via XLU roll + zero mask at the H
        # boundary; the W boundary (zero pad) is encoded in the band matrices.
        a_up = jnp.where(not_top, pltpu.roll(a, shift=1, axis=0), 0.0)      # a[h-1]
        a_dn = jnp.where(not_bot, pltpu.roll(a, shift=H - 1, axis=0), 0.0)  # a[h+1]
        y = jnp.dot(a_up, m_ref[0], preferred_element_type=jnp.float32)
        y = y + jnp.dot(a, m_ref[1], preferred_element_type=jnp.float32)
        y = y + jnp.dot(a_dn, m_ref[2], preferred_element_type=jnp.float32)
        return y

    # conv1 -> BN1 (scale folded into m1, bias added here) -> ReLU
    a1 = jnp.maximum(conv3x3(x, m1_ref) + b1_ref[...], 0.0)
    # conv2 -> BN2 -> residual add -> ReLU (residual is x, same fused layout)
    out = jnp.maximum(conv3x3(a1, m2_ref) + b2_ref[...] + x, 0.0)
    o_ref[0] = out.astype(o_ref.dtype)


def _band_weights(w_hwio, W, scale):
    """(3,3,Cin,Cout) HWIO conv weights -> (3, W*Cin, W*Cout) banded matrices.

    M[dy][ws*Cin+ci, w*Cout+co] = scale[co] * w[dy, ws-w+1, ci, co] for
    |ws-w| <= 1, else 0, so that fused-layout row a[h+dy-1] @ M[dy] gives the
    dy contribution of a 3x3 / pad=1 / stride=1 convolution (with the
    W-boundary zero padding included) already multiplied by the folded BN
    scale for its output channel.
    """
    Cin, Cout = w_hwio.shape[2], w_hwio.shape[3]
    w = w_hwio * scale.astype(w_hwio.dtype)          # fold BN scale into Cout
    ws = jnp.arange(W)[:, None]
    wd = jnp.arange(W)[None, :]
    sel = jnp.stack([(ws - wd == dx - 1) for dx in range(3)]).astype(w.dtype)
    # M[dy, ws, ci, wd, co] = sum_dx sel[dx, ws, wd] * w[dy, dx, ci, co]
    M = jnp.einsum('xsw,yxio->ysiwo', sel, w,
                   precision=jax.lax.Precision.HIGHEST)
    return M.reshape(3, W * Cin, W * Cout)


def basic_block_forward(x_nchw, w1, scale1, bias1, w2, scale2, bias2):
    """BasicBlock forward. x_nchw: (N, Cin, H, W) float32. Returns (N, Cout, H, W)."""
    N, Cin, H, W = x_nchw.shape
    Cmid, Cout = w1.shape[3], w2.shape[3]
    assert Cin == Cmid == Cout, "downsample is None -> identity residual needs equal channels"
    C = Cin
    L = W * C  # fused lane dimension (128 for the test shape)

    # glue: NCHW -> NHWC -> lane-dense (N, H, W*C); no padded HBM copy, no
    # duplicated residual array.
    x_flat = jnp.transpose(x_nchw, (0, 2, 3, 1)).reshape(N, H, L).astype(jnp.float32)

    # one-time weight preprocessing (like BN folding): banded conv matrices
    # with the BN scale folded into the output-channel columns, plus per-lane
    # BN biases in the fused (w*C + c) layout.
    M1 = _band_weights(w1.astype(jnp.float32), W, scale1.astype(jnp.float32))  # (3, L, L)
    M2 = _band_weights(w2.astype(jnp.float32), W, scale2.astype(jnp.float32))  # (3, L, L)
    b1 = jnp.tile(bias1.astype(jnp.float32), W).reshape(1, L)
    b2 = jnp.tile(bias2.astype(jnp.float32), W).reshape(1, L)

    out_flat = pl.pallas_call(
        basic_block_kernel,
        out_shape=jax.ShapeDtypeStruct((N, H, L), jnp.float32),
        grid=(N,),  # one batch element per grid step
        in_specs=[
            pl.BlockSpec((1, H, L), lambda n: (n, 0, 0)),
            pl.BlockSpec((3, L, L), lambda n: (0, 0, 0)),   # weights: constant block -> DMA'd once
            pl.BlockSpec((1, L), lambda n: (0, 0)),
            pl.BlockSpec((3, L, L), lambda n: (0, 0, 0)),
            pl.BlockSpec((1, L), lambda n: (0, 0)),
        ],
        out_specs=pl.BlockSpec((1, H, L), lambda n: (n, 0, 0)),
        compiler_params=pltpu.CompilerParams(
            dimension_semantics=("parallel",)),  # batch axis is independent (v7x 2 TCs)
    )(x_flat, M1, b1, M2, b2)

    return jnp.transpose(out_flat.reshape(N, H, W, C), (0, 3, 1, 2))


def reference_forward(x_nchw, w1, scale1, bias1, w2, scale2, bias2):
    """Plain-JAX reference of the same forward pass (for correctness check)."""
    x = jnp.transpose(x_nchw, (0, 2, 3, 1)).astype(jnp.float32)
    dn = ('NHWC', 'HWIO', 'NHWC')
    hi = jax.lax.Precision.HIGHEST
    out = jax.lax.conv_general_dilated(x, w1, (1, 1), 'SAME',
                                       dimension_numbers=dn, precision=hi)
    out = jnp.maximum(out * scale1 + bias1, 0.0)
    out = jax.lax.conv_general_dilated(out, w2, (1, 1), 'SAME',
                                       dimension_numbers=dn, precision=hi)
    out = out * scale2 + bias2
    out = jnp.maximum(out + x, 0.0)
    return jnp.transpose(out, (0, 3, 1, 2))


if __name__ == "__main__":
    # BasicBlock(in_channels=8, out_channels=8, stride=1, dilation=1, downsample=None)
    # W * C = 16 * 8 = 128 -> fully lane-dense blocks.
    N, C, H, W = 2, 8, 16, 16
    key = jax.random.PRNGKey(0)
    ks = jax.random.split(key, 12)

    x = jax.random.normal(ks[0], (N, C, H, W), jnp.float32)

    # conv weights in HWIO (PyTorch OIHW conv1/conv2 weights, synthetic init, bias=False)
    w1 = 0.1 * jax.random.normal(ks[1], (3, 3, C, C), jnp.float32)
    w2 = 0.1 * jax.random.normal(ks[2], (3, 3, C, C), jnp.float32)

    # BatchNorm parameters / running stats (inference mode), folded to scale/bias
    eps = 1e-5
    g1 = 1.0 + 0.1 * jax.random.normal(ks[3], (C,), jnp.float32)
    be1 = 0.1 * jax.random.normal(ks[4], (C,), jnp.float32)
    m1 = 0.1 * jax.random.normal(ks[5], (C,), jnp.float32)
    v1 = jax.random.uniform(ks[6], (C,), jnp.float32, minval=0.5, maxval=1.5)
    g2 = 1.0 + 0.1 * jax.random.normal(ks[7], (C,), jnp.float32)
    be2 = 0.1 * jax.random.normal(ks[8], (C,), jnp.float32)
    m2 = 0.1 * jax.random.normal(ks[9], (C,), jnp.float32)
    v2 = jax.random.uniform(ks[10], (C,), jnp.float32, minval=0.5, maxval=1.5)

    scale1 = g1 / jnp.sqrt(v1 + eps)
    bias1 = be1 - m1 * scale1
    scale2 = g2 / jnp.sqrt(v2 + eps)
    bias2 = be2 - m2 * scale2

    out = basic_block_forward(x, w1, scale1, bias1, w2, scale2, bias2)
    out = jax.block_until_ready(out)

    ref = reference_forward(x, w1, scale1, bias1, w2, scale2, bias2)
    err = float(jnp.max(jnp.abs(out - ref)))
    assert out.shape == (N, C, H, W)
    # all-f32 path: typical observed error is ~1e-6; 1e-3 catches layout /
    # precision regressions.
    assert err < 1e-3, f"max abs err too large: {err}"
    print("KERNEL_OK")
</pallas_src>

<mosaic_0001>
module attributes {stable_mosaic.version = 11 : i64} {
  func.func @basic_block_kernel(%arg0: i32, %arg1: memref<1x16x128xf32, #tpu.memory_space<vmem>>, %arg2: memref<3x128x128xf32, #tpu.memory_space<vmem>>, %arg3: memref<1x128xf32, #tpu.memory_space<vmem>>, %arg4: memref<3x128x128xf32, #tpu.memory_space<vmem>>, %arg5: memref<1x128xf32, #tpu.memory_space<vmem>>, %arg6: memref<1x16x128xf32, #tpu.memory_space<vmem>>) attributes {dimension_semantics = [#tpu.dimension_semantics<parallel>], iteration_bounds = array<i64: 2>, scalar_prefetch = 0 : i64, scratch_operands = 0 : i64, tpu.core_type = #tpu.core_type<tc>, window_params = [{transform_indices = @transform_0, window_bounds = array<i64: 1, 16, 128>}, {pipeline_mode = #tpu.pipeline_mode<synchronous>, transform_indices = @transform_1, window_bounds = array<i64: 3, 128, 128>}, {pipeline_mode = #tpu.pipeline_mode<synchronous>, transform_indices = @transform_2, window_bounds = array<i64: 1, 128>}, {pipeline_mode = #tpu.pipeline_mode<synchronous>, transform_indices = @transform_3, window_bounds = array<i64: 3, 128, 128>}, {pipeline_mode = #tpu.pipeline_mode<synchronous>, transform_indices = @transform_4, window_bounds = array<i64: 1, 128>}, {transform_indices = @transform_5, window_bounds = array<i64: 1, 16, 128>}]} {
    %c0 = arith.constant 0 : index
    %c0_0 = arith.constant 0 : index
    %c0_1 = arith.constant 0 : index
    %0 = vector.load %arg1[%c0, %c0_0, %c0_1] : memref<1x16x128xf32, #tpu.memory_space<vmem>>, vector<1x16x128xf32>
    %1 = vector.shape_cast %0 : vector<1x16x128xf32> to vector<16x128xf32>
    %2 = tpu.iota {dimensions = array<i32: 0>} : vector<16x128xi32>
    %c0_i32 = arith.constant 0 : i32
    %3 = vector.broadcast %c0_i32 : i32 to vector<16x128xi32>
    %4 = arith.cmpi ne, %2, %3 : vector<16x128xi32>
    %c15_i32 = arith.constant 15 : i32
    %5 = vector.broadcast %c15_i32 : i32 to vector<16x128xi32>
    %6 = arith.cmpi ne, %2, %5 : vector<16x128xi32>
    %c1_i32 = arith.constant 1 : i32
    %7 = tpu.dynamic_rotate %1 by %c1_i32 dim 0 : vector<16x128xf32>, i32 -> vector<16x128xf32>
    %cst = arith.constant 0.000000e+00 : f32
    %8 = vector.broadcast %cst : f32 to vector<16x128xf32>
    %9 = arith.select %4, %7, %8 : vector<16x128xi1>, vector<16x128xf32>
    %c15_i32_2 = arith.constant 15 : i32
    %10 = tpu.dynamic_rotate %1 by %c15_i32_2 dim 0 : vector<16x128xf32>, i32 -> vector<16x128xf32>
    %cst_3 = arith.constant 0.000000e+00 : f32
    %11 = vector.broadcast %cst_3 : f32 to vector<16x128xf32>
    %12 = arith.select %6, %10, %11 : vector<16x128xi1>, vector<16x128xf32>
    %c0_4 = arith.constant 0 : index
    %c0_5 = arith.constant 0 : index
    %c0_6 = arith.constant 0 : index
    %13 = vector.load %arg2[%c0_4, %c0_5, %c0_6] : memref<3x128x128xf32, #tpu.memory_space<vmem>>, vector<1x128x128xf32>
    %14 = vector.shape_cast %13 : vector<1x128x128xf32> to vector<128x128xf32>
    %cst_7 = arith.constant dense<0.000000e+00> : vector<16x128xf32>
    %15 = tpu.matmul %9, %14, %cst_7 {dimension_numbers = #tpu.dot_dimension_numbers<[1], [0], [0], [1], [0, 0, 1, 1], [], []>} : vector<16x128xf32>, vector<128x128xf32>, vector<16x128xf32> -> vector<16x128xf32>
    %c1 = arith.constant 1 : index
    %c0_8 = arith.constant 0 : index
    %c0_9 = arith.constant 0 : index
    %16 = vector.load %arg2[%c1, %c0_8, %c0_9] : memref<3x128x128xf32, #tpu.memory_space<vmem>>, vector<1x128x128xf32>
    %17 = vector.shape_cast %16 : vector<1x128x128xf32> to vector<128x128xf32>
    %cst_10 = arith.constant dense<0.000000e+00> : vector<16x128xf32>
    %18 = tpu.matmul %1, %17, %cst_10 {dimension_numbers = #tpu.dot_dimension_numbers<[1], [0], [0], [1], [0, 0, 1, 1], [], []>} : vector<16x128xf32>, vector<128x128xf32>, vector<16x128xf32> -> vector<16x128xf32>
    %19 = arith.addf %15, %18 : vector<16x128xf32>
    %c2 = arith.constant 2 : index
    %c0_11 = arith.constant 0 : index
    %c0_12 = arith.constant 0 : index
    %20 = vector.load %arg2[%c2, %c0_11, %c0_12] : memref<3x128x128xf32, #tpu.memory_space<vmem>>, vector<1x128x128xf32>
    %21 = vector.shape_cast %20 : vector<1x128x128xf32> to vector<128x128xf32>
    %cst_13 = arith.constant dense<0.000000e+00> : vector<16x128xf32>
    %22 = tpu.matmul %12, %21, %cst_13 {dimension_numbers = #tpu.dot_dimension_numbers<[1], [0], [0], [1], [0, 0, 1, 1], [], []>} : vector<16x128xf32>, vector<128x128xf32>, vector<16x128xf32> -> vector<16x128xf32>
    %23 = arith.addf %19, %22 : vector<16x128xf32>
    %c0_14 = arith.constant 0 : index
    %c0_15 = arith.constant 0 : index
    %24 = vector.load %arg3[%c0_14, %c0_15] : memref<1x128xf32, #tpu.memory_space<vmem>>, vector<1x128xf32>
    %25 = vector.broadcast %24 : vector<1x128xf32> to vector<16x128xf32>
    %26 = arith.addf %23, %25 : vector<16x128xf32>
    %cst_16 = arith.constant 0.000000e+00 : f32
    %27 = vector.broadcast %cst_16 : f32 to vector<16x128xf32>
    %28 = arith.maximumf %26, %27 : vector<16x128xf32>
    %c1_i32_17 = arith.constant 1 : i32
    %29 = tpu.dynamic_rotate %28 by %c1_i32_17 dim 0 : vector<16x128xf32>, i32 -> vector<16x128xf32>
    %cst_18 = arith.constant 0.000000e+00 : f32
    %30 = vector.broadcast %cst_18 : f32 to vector<16x128xf32>
    %31 = arith.select %4, %29, %30 : vector<16x128xi1>, vector<16x128xf32>
    %c15_i32_19 = arith.constant 15 : i32
    %32 = tpu.dynamic_rotate %28 by %c15_i32_19 dim 0 : vector<16x128xf32>, i32 -> vector<16x128xf32>
    %cst_20 = arith.constant 0.000000e+00 : f32
    %33 = vector.broadcast %cst_20 : f32 to vector<16x128xf32>
    %34 = arith.select %6, %32, %33 : vector<16x128xi1>, vector<16x128xf32>
    %c0_21 = arith.constant 0 : index
    %c0_22 = arith.constant 0 : index
    %c0_23 = arith.constant 0 : index
    %35 = vector.load %arg4[%c0_21, %c0_22, %c0_23] : memref<3x128x128xf32, #tpu.memory_space<vmem>>, vector<1x128x128xf32>
    %36 = vector.shape_cast %35 : vector<1x128x128xf32> to vector<128x128xf32>
    %cst_24 = arith.constant dense<0.000000e+00> : vector<16x128xf32>
    %37 = tpu.matmul %31, %36, %cst_24 {dimension_numbers = #tpu.dot_dimension_numbers<[1], [0], [0], [1], [0, 0, 1, 1], [], []>} : vector<16x128xf32>, vector<128x128xf32>, vector<16x128xf32> -> vector<16x128xf32>
    %c1_25 = arith.constant 1 : index
    %c0_26 = arith.constant 0 : index
    %c0_27 = arith.constant 0 : index
    %38 = vector.load %arg4[%c1_25, %c0_26, %c0_27] : memref<3x128x128xf32, #tpu.memory_space<vmem>>, vector<1x128x128xf32>
    %39 = vector.shape_cast %38 : vector<1x128x128xf32> to vector<128x128xf32>
    %cst_28 = arith.constant dense<0.000000e+00> : vector<16x128xf32>
    %40 = tpu.matmul %28, %39, %cst_28 {dimension_numbers = #tpu.dot_dimension_numbers<[1], [0], [0], [1], [0, 0, 1, 1], [], []>} : vector<16x128xf32>, vector<128x128xf32>, vector<16x128xf32> -> vector<16x128xf32>
    %41 = arith.addf %37, %40 : vector<16x128xf32>
    %c2_29 = arith.constant 2 : index
    %c0_30 = arith.constant 0 : index
    %c0_31 = arith.constant 0 : index
    %42 = vector.load %arg4[%c2_29, %c0_30, %c0_31] : memref<3x128x128xf32, #tpu.memory_space<vmem>>, vector<1x128x128xf32>
    %43 = vector.shape_cast %42 : vector<1x128x128xf32> to vector<128x128xf32>
    %cst_32 = arith.constant dense<0.000000e+00> : vector<16x128xf32>
    %44 = tpu.matmul %34, %43, %cst_32 {dimension_numbers = #tpu.dot_dimension_numbers<[1], [0], [0], [1], [0, 0, 1, 1], [], []>} : vector<16x128xf32>, vector<128x128xf32>, vector<16x128xf32> -> vector<16x128xf32>
    %45 = arith.addf %41, %44 : vector<16x128xf32>
    %c0_33 = arith.constant 0 : index
    %c0_34 = arith.constant 0 : index
    %46 = vector.load %arg5[%c0_33, %c0_34] : memref<1x128xf32, #tpu.memory_space<vmem>>, vector<1x128xf32>
    %47 = vector.broadcast %46 : vector<1x128xf32> to vector<16x128xf32>
    %48 = arith.addf %45, %47 : vector<16x128xf32>
    %49 = arith.addf %48, %1 : vector<16x128xf32>
    %cst_35 = arith.constant 0.000000e+00 : f32
    %50 = vector.broadcast %cst_35 : f32 to vector<16x128xf32>
    %51 = arith.maximumf %49, %50 : vector<16x128xf32>
    %c0_36 = arith.constant 0 : index
    %c0_37 = arith.constant 0 : index
    %c0_38 = arith.constant 0 : index
    %52 = vector.load %arg6[%c0_36, %c0_37, %c0_38] : memref<1x16x128xf32, #tpu.memory_space<vmem>>, vector<1x16x128xf32>
    %53 = vector.shape_cast %52 : vector<1x16x128xf32> to vector<16x128xf32>
    %54 = vector.shape_cast %51 : vector<16x128xf32> to vector<1x16x128xf32>
    tpu.vector_store %arg6[%c0_36, %c0_37, %c0_38], %54 {strides = array<i32>} : memref<1x16x128xf32, #tpu.memory_space<vmem>>, vector<1x16x128xf32>,
    return
  }
  func.func @transform_0(%arg0: i32) -> (i32, i32, i32) {
    %c0_i32 = arith.constant 0 : i32
    %c0_i32_0 = arith.constant 0 : i32
    %c0_i32_1 = arith.constant 0 : i32
    return %arg0, %c0_i32, %c0_i32_0 : i32, i32, i32
  }
  func.func @transform_1(%arg0: i32) -> (i32, i32, i32) {
    %c0_i32 = arith.constant 0 : i32
    %c0_i32_0 = arith.constant 0 : i32
    %c0_i32_1 = arith.constant 0 : i32
    %c0_i32_2 = arith.constant 0 : i32
    return %c0_i32, %c0_i32_0, %c0_i32_1 : i32, i32, i32
  }
  func.func @transform_2(%arg0: i32) -> (i32, i32) {
    %c0_i32 = arith.constant 0 : i32
    %c0_i32_0 = arith.constant 0 : i32
    %c0_i32_1 = arith.constant 0 : i32
    return %c0_i32, %c0_i32_0 : i32, i32
  }
  func.func @transform_3(%arg0: i32) -> (i32, i32, i32) {
    %c0_i32 = arith.constant 0 : i32
    %c0_i32_0 = arith.constant 0 : i32
    %c0_i32_1 = arith.constant 0 : i32
    %c0_i32_2 = arith.constant 0 : i32
    return %c0_i32, %c0_i32_0, %c0_i32_1 : i32, i32, i32
  }
  func.func @transform_4(%arg0: i32) -> (i32, i32) {
    %c0_i32 = arith.constant 0 : i32
    %c0_i32_0 = arith.constant 0 : i32
    %c0_i32_1 = arith.constant 0 : i32
    return %c0_i32, %c0_i32_0 : i32, i32
  }
  func.func @transform_5(%arg0: i32) -> (i32, i32, i32) {
    %c0_i32 = arith.constant 0 : i32
    %c0_i32_0 = arith.constant 0 : i32
    %c0_i32_1 = arith.constant 0 : i32
    return %arg0, %c0_i32, %c0_i32_0 : i32, i32, i32
  }
}

</mosaic_0001>

<bundles_post_ra>
// kernel: tpu_custom_call.1
= control target key start
LH: loop header
LB: loop body
LE: loop exit
PB: predicated region body
PF: predicated region fallthrough
CT: control target
= control target key end

     0   :  { %10 = vsyncpa [#allocation3], 0  ;;  %s1219_s0 = inlined_call_operand.hbm [shape: f32[2,16,128], index: 0, kind: input, shape index: {}]   ;;  %s1220_s1 = inlined_call_operand.hbm [shape: f32[3,128,128], index: 1, kind: input, shape index: {}]   ;;  %s1221_s2 = inlined_call_operand.vmem [shape: f32[1,128], index: 2, kind: input, shape index: {}]   ;;  %s1222_s3 = inlined_call_operand.hbm [shape: f32[3,128,128], index: 3, kind: input, shape index: {}]   ;;  %s1223_s4 = inlined_call_operand.vmem [shape: f32[1,128], index: 4, kind: input, shape index: {}]   ;;  %s1224_s5 = inlined_call_operand.hbm [shape: f32[2,16,128], index: 5, kind: output, shape index: {}]  }
   0x1   :  { %12 = vsyncpa [#allocation3 + $0x1], 0 }
   0x2   :  { %13 = vsyncpa [#allocation6], 0 }
   0x3   :  { %14 = vsyncpa [#allocation4], 0 }
   0x4   :  { %16 = vsyncpa [#allocation4 + $0x1], 0  ;;  %s1010_s18 = smov 0   ;;  %s1012_s19 = smov 0  }
   0x5   :  { %s1014_s20 = smov 0   ;;  %s1016_s21 = smov 0  }
   0x6 LB: > { %s1031_s22 = sadd.s32 4294967295, %s972_s21   ;;  %s683_s23 = sadd.s32 4294967294, %s972_s21   ;;  %s972_s21 = sphi %s1016_s21, %s1236_s21   ;;  %s968_s20 = sphi %s1014_s20, %s1235_s20   ;;  %s964_s19 = sphi %s1012_s19, %s1234_s19   ;;  %s960_s18 = sphi %s1010_s18, %s1233_s18  }
   0x7   : > { %p42_p0 = scmp.ne.s32.totalorder %s964_s19, %s960_s18  ;;  %p43_p1 = scmp.eq.s32.totalorder %s1031_s22, 0 }
   0x8   : > { %p150_p2 = scmp.eq.s32.totalorder %s1031_s22, 1  ;;  %p156_p3 = scmp.eq.s32.totalorder %s683_s23, 1 }
   0x9   : > { %p1040_p4 = por %p43_p1, %p42_p0  ;;  %p684_p5 = scmp.ge.s32.totalorder %s972_s21, 1 }
   0xa   : > { %p1045_p6 = por %p156_p3, %p42_p0  ;;  %p163_p7 = scmp.lt.s32.totalorder %s972_s21, 3 }
   0xb   : > { %s174_s28 = sshll.u32 %s1220_s1, 4  ;;  %s974_s30 = smov [#allocation5]   ;;  %s175_s28 = int_to_ptr.hbm [resolvable:$true] %s174_s28 }
   0xc   : > { %p1053_p8 = pnand %p684_p5, %p163_p7  ;;  %s176_s6 = sshll.u32 %s974_s30, 4  ;;  %s177_s6 = int_to_ptr.vmem [resolvable:$true] %s176_s6 }
   0xd   : > { %s191_s9 = sshll.u32 %s1222_s3, 4  ;;  %s1225_s10 = smov 128   ;;  %s192_s9 = int_to_ptr.hbm [resolvable:$true] %s191_s9 }
   0xe   : > { %p751_p9 = pneg %p1053_p8  ;;  %s976_s11 = smov 8  }
   0xf   : > { %s977_s12 = smov [#allocation7]   ;;  %s1072_s14 = sadd.s32 1, %s972_s21  }
  0x10   : > { %p752_p10 = pnand %p751_p9, %p43_p1  ;;  %s193_s13 = sshll.u32 %s977_s12, 4  ;;  %s194_s13 = int_to_ptr.vmem [resolvable:$true] %s193_s13 }
  0x11   : > { %s29_s15 = sadd.s32 1, %s968_s20  ;;  %s26_s16 = ssub.s32 %s972_s21, %s1072_s14 }
  0x12   : > { %754 = dma.hbm_to_vmem [thread:$0]  (!%p752_p10), %s175_s28, 6144, %s177_s6, [#allocation6], %s1225_s10, %s1225_s10, %s976_s11  }
  0x13   : > { %757 = dma.hbm_to_vmem [thread:$0]  (!%p752_p10), %s192_s9, 6144, %s194_s13, [#allocation6], %s1225_s10, %s1225_s10, %s976_s11  }
  0x14   : > { %p36_p12 = scmp.ne.s32.totalorder %s968_s20, %s964_s19  ;;  %p27_p13 = scmp.eq.s32.totalorder %s26_s16, 0 }
  0x15   : > { %p37_p0 = scmp.eq.s32.totalorder %s972_s21, 0  ;;  %p768_p5 = scmp.lt.s32.totalorder %s972_s21, 2 }
  0x16   : > { %p1082_p3 = por %p150_p2, %p36_p12  ;;  %s210_s26 = sand.u32 1, %s968_s20  }
  0x17   : > { %s1088_s23 = scalar_select %p27_p13, %s968_s20, %s29_s15  }
  0x18   : > { %p38_p7 = por %p37_p0, %p36_p12  ;;  %s688_s27 = sshll.u32 %s210_s26, 4 }
  0x19   : > { %s705_s28 = sshll.u32 %s972_s21, 4  ;;  %s214_s8 = scalar_lea.vmem [#allocation2], %s688_s27 }
  0x1a   : > { %s219_s7 = scalar_lea.hbm %s1219_s0, %s705_s28  ;;  %s222_s9 = sshll.u32 %s214_s8, 4  ;;  %s223_s9 = int_to_ptr.vmem [resolvable:$true] %s222_s9 }
  0x1b   : > { %s220_s12 = sshll.u32 %s219_s7, 4  ;;  %p1095_p2 = pnand %p768_p5, %p38_p7  ;;  %s221_s12 = int_to_ptr.hbm [resolvable:$true] %s220_s12 }
  0x1c   : > { %s211_s15 = scalar_lea.sflag [#allocation3], %s210_s26  ;;  %s872_s16 = sshra.s32 %s221_s12, 4  ;;  %s873_s16 = int_to_ptr.hbm [resolvable:$true] %s872_s16 }
  0x1d   : > { %s874_s10 = scalar_lea.hbm %s873_s16, 16  ;;  %p876_p10 = pneg %p1095_p2 }
  0x1e   : > { %p875_p9 = scmp.ne.s32.totalorder %s873_s16, %s874_s10  ;;  %s879_s30 = scalar_lea.hbm %s1219_s0, 32 }
  0x1f   : > { %p880_p0 = scmp.lt.s32.totalorder %s873_s16, %s1219_s0  ;;  %p881_p5 = scmp.lt.s32.totalorder %s879_s30, %s874_s10 }
  0x20   : > { %p877_p12 = pnand %p876_p10, %p875_p9 }
  0x21   : > { %p882_p7 = por %p881_p5, %p880_p0 }
  0x22   : > { %p878_p13 = pneg %p877_p12 }
  0x24   : > { %p883_p11 = pnand %p882_p7, %p878_p13 }
  0x26   : > { %886 = shalt.err (!%p883_p11)
}
  0x27   : > { %s1231_s26 = smov 128   ;;  %234 = sbr.rel (%p1053_p8) target bundleno = 377 (0x179), region = 40 }
  0x28   : > { %761 = dma.hbm_to_vmem [thread:$0]  (!%p1095_p2), %s221_s12, 256, %s223_s9, %s211_s15, %s1231_s26, %s1231_s26, %s976_s11  }
  0x29   : > { %s1115_s8 = sand.u32 (!%p1053_p8), 1, %s964_s19  }
  0x2a   : > { %s692_s10 = sshll.u32 (!%p1053_p8), %s1115_s8, 4  ;;  %s237_s16 = scalar_lea.sflag (!%p1053_p8), [#allocation3], %s1115_s8 }
  0x2b   : > { %s1121_s28 = scalar_lea.vmem (!%p1053_p8), [#allocation2], %s692_s10 }
  0x2c   : > { %947 = dma.done.wait (%p1040_p4), %s237_s16, 256  }
  0x2d   : > { %949 = vsyncadd (%p1040_p4), %s237_s16, 4294967040 }
  0x2e   : > { %951 = dma.done.wait (%p43_p1), [#allocation6], 12288  }
  0x2f   : > { %953 = vsyncadd (%p43_p1), [#allocation6], 4294955008  ;;  %v396_v0 = vld [vmem:[#allocation5 + $0x178] sm:$0xff]  ;;  %v395_v1 = vld [vmem:[#allocation5 + $0x170] sm:$0xff]  ;;  %v280_v30 = vlaneseq  ;;  %s706_s12 = sshll.u32 %s1031_s22, 4  ;;  %s277_s13 = scalar_lea.vmem [#allocation8], %s692_s10 }
  0x30   : > { %v333_v2 = vld [vmem:[#allocation5 + $0xf8] sm:$0xff]  ;;  %397 = vmatpush.msra.mxu2 %v396_v0  ;;  %v332_v4 = vld [vmem:[#allocation5 + $0xf0] sm:$0xff]  ;;  %v394_v5 = vld [vmem:[#allocation5 + $0x168] sm:$0xff]  ;;  %s587_s30 = scalar_lea.hbm %s1224_s5, %s706_s12  ;;  %s588_s6 = sshll.u32 %s277_s13, 4  ;;  %s589_s6 = int_to_ptr.vmem [resolvable:$true] %s588_s6 }
  0x31   : > { %334 = vmatpush.msra.mxu0 %v333_v2  ;;  %v316_v3 = vld [vmem:[#allocation5 + $0x78] sm:$0xff]  ;;  %v315_v6 = vld [vmem:[#allocation5 + $0x70] sm:$0xff]  ;;  %v331_v7 = vld [vmem:[#allocation5 + $0xe8] sm:$0xff]  ;;  %v1131_v40 = vshrl.u32 %v280_v30, 7  ;;  %s590_s7 = sshll.u32 %s587_s30, 4  ;;  %s576_s22 = scalar_lea.sflag [#allocation4], %s1115_s8  ;;  %s591_s7 = int_to_ptr.hbm [resolvable:$true] %s590_s7 }
  0x32   : > { %357 = vmatpush.msra.mxu1 %v316_v3  ;;  %398 = vmatpush.msra.mxu2 %v395_v1  ;;  %v314_v8 = vld [vmem:[#allocation5 + $0x68] sm:$0xff]  ;;  %v393_v9 = vld [vmem:[#allocation5 + $0x160] sm:$0xff]  ;;  %v392_v12 = vld [vmem:[#allocation5 + $0x158] sm:$0xff]  ;;  %s916_s26 = sshra.s32 %s591_s7, 4  ;;  %s922_s24 = scalar_lea.hbm %s1224_s5, 32  ;;  %s917_s26 = int_to_ptr.hbm [resolvable:$true] %s916_s26 }
  0x33   : > { %335 = vmatpush.msra.mxu0 %v332_v4  ;;  %v330_v10 = vld [vmem:[#allocation5 + $0xe0] sm:$0xff]  ;;  %v329_v13 = vld [vmem:[#allocation5 + $0xd8] sm:$0xff]  ;;  %v391_v15 = vld [vmem:[#allocation5 + $0x150] sm:$0xff]  ;;  %vm296_vm0 = vcmp.lt.s32.totalorder %v1131_v40, 7  ;;  %vm289_vm1 = vcmp.lt.s32.totalorder %v1131_v40, 1  ;;  %vm283_vm2 = vcmp.ne.s32.totalorder %v1131_v40, 0  ;;  %p923_p11 = scmp.lt.s32.totalorder %s917_s26, %s1224_s5 }
  0x34   : > { %358 = vmatpush.msra.mxu1 %v315_v6  ;;  %399 = vmatpush.msra.mxu2 %v394_v5  ;;  %v313_v11 = vld [vmem:[#allocation5 + $0x60] sm:$0xff]  ;;  %v312_v14 = vld [vmem:[#allocation5 + $0x58] sm:$0xff]  ;;  %v328_v16 = vld [vmem:[#allocation5 + $0xd0] sm:$0xff]  ;;  %v1154_v3 = vadd.s32 8, %v1131_v40  ;;  %s918_s10 = scalar_lea.hbm %s917_s26, 16 }
  0x35   : > { %336 = vmatpush.msra.mxu0 %v331_v7  ;;  %v311_v17 = vld [vmem:[#allocation5 + $0x50] sm:$0xff]  ;;  %v390_v18 = vld [vmem:[#allocation5 + $0x148] sm:$0xff]  ;;  %v389_v21 = vld [vmem:[#allocation5 + $0x140] sm:$0xff]  ;;  %p919_p1 = scmp.ne.s32.totalorder %s917_s26, %s918_s10  ;;  %p924_p2 = scmp.lt.s32.totalorder %s922_s24, %s918_s10 }
  0x36   : > { %359 = vmatpush.msra.mxu1 %v314_v8  ;;  %400 = vmatpush.msra.mxu2 %v393_v9  ;;  %v327_v19 = vld [vmem:[#allocation5 + $0xc8] sm:$0xff]  ;;  %v326_v22 = vld [vmem:[#allocation5 + $0xc0] sm:$0xff]  ;;  %v388_v24 = vld [vmem:[#allocation5 + $0x138] sm:$0xff]  ;;  %vm286_vm3 = vcmp.ne.s32.totalorder %v1154_v3, 15 }
  0x37   : > { %337 = vmatpush.msra.mxu0 %v330_v10  ;;  %v310_v20 = vld [vmem:[#allocation5 + $0x48] sm:$0xff]  ;;  %v309_v23 = vld [vmem:[#allocation5 + $0x40] sm:$0xff]  ;;  %v325_v25 = vld [vmem:[#allocation5 + $0xb8] sm:$0xff]  ;;  %p920_p4 = pnand %p919_p1, %p1082_p3  ;;  %p925_p9 = por %p924_p2, %p923_p11 }
  0x38   : > { %360 = vmatpush.msra.mxu1 %v313_v11  ;;  %401 = vmatpush.msra.mxu2 %v392_v12  ;;  %v308_v26 = vld [vmem:[#allocation5 + $0x38] sm:$0xff]  ;;  %v387_v27 = vld [vmem:[#allocation5 + $0x130] sm:$0xff]  ;;  %v386_v32 = vld [vmem:[#allocation5 + $0x128] sm:$0xff] }
  0x39   : > { %338 = vmatpush.msra.mxu0 %v329_v13  ;;  %v324_v28 = vld [vmem:[#allocation5 + $0xb0] sm:$0xff]  ;;  %v474_v31 = vld [vmem:[#allocation7 + $0xf8] sm:$0xff]  ;;  %v323_v33 = vld [vmem:[#allocation5 + $0xa8] sm:$0xff]  ;;  %p921_p8 = pneg %p920_p4 }
  0x3a   : > { %361 = vmatpush.msra.mxu1 %v312_v14  ;;  %402 = vmatpush.msra.mxu2 %v391_v15  ;;  %v307_v29 = vld [vmem:[#allocation5 + $0x30] sm:$0xff]  ;;  %v306_v34 = vld [vmem:[#allocation5 + $0x28] sm:$0xff]  ;;  %v385_v36 = vld [vmem:[#allocation5 + $0x120] sm:$0xff] }
  0x3b   : > { %339 = vmatpush.msra.mxu0 %v328_v16  ;;  %v473_v35 = vld [vmem:[#allocation7 + $0xf0] sm:$0xff]  ;;  %v322_v37 = vld [vmem:[#allocation5 + $0xa0] sm:$0xff]  ;;  %475 = vmatpush.msra.mxu3 %v474_v31  ;;  %v384_v38 = vld [vmem:[#allocation5 + $0x118] sm:$0xff]  ;;  %p926_p10 = pnand %p925_p9, %p921_p8 }
  0x3c   : > { %362 = vmatpush.msra.mxu1 %v311_v17  ;;  %403 = vmatpush.msra.mxu2 %v390_v18  ;;  %v305_v39 = vld [vmem:[#allocation5 + $0x20] sm:$0xff]  ;;  %v472_v41 = vld [vmem:[#allocation7 + $0xe8] sm:$0xff]  ;;  %v321_v42 = vld [vmem:[#allocation5 + $0x98] sm:$0xff] }
  0x3d   : > { %340 = vmatpush.msra.mxu0 %v327_v19  ;;  %v1134_v43 = vld [vmem:[%s1121_s28] sm:$0xff]  ;;  %v1137_v44 = vld [vmem:[%s1121_s28 + $0x8] sm:$0xff]  ;;  %476 = vmatpush.msra.mxu3 %v473_v35 }
  0x3e   : > { %363 = vmatpush.msra.mxu1 %v310_v20  ;;  %404 = vmatpush.msra.mxu2 %v389_v21  ;;  %v304_v45 = vld [vmem:[#allocation5 + $0x18] sm:$0xff]  ;;  %v471_v46 = vld [vmem:[#allocation7 + $0xe0] sm:$0xff]  ;;  %v383_v47 = vld [vmem:[#allocation5 + $0x110] sm:$0xff]  ;;  %v294_v51 = vrot.slane %v1134_v43, 1  ;;  %v295_v52 = vrot.slane %v1137_v44, 1  ;;  %v287_v55 = vrot.slane %v1134_v43, 7 }
  0x3f   : > { %341 = vmatpush.msra.mxu0 %v326_v22  ;;  %v382_v48 = vld [vmem:[#allocation5 + $0x108] sm:$0xff]  ;;  %v320_v49 = vld [vmem:[#allocation5 + $0x90] sm:$0xff]  ;;  %477 = vmatpush.msra.mxu3 %v472_v41  ;;  %v470_v54 = vld [vmem:[#allocation7 + $0xd8] sm:$0xff]  ;;  %v288_v56 = vrot.slane %v1137_v44, 7 }
  0x40   : > { %364 = vmatpush.msra.mxu1 %v309_v23  ;;  %405 = vmatpush.msra.mxu2 %v388_v24  ;;  %v303_v50 = vld [vmem:[#allocation5 + $0x10] sm:$0xff]  ;;  %v319_v53 = vld [vmem:[#allocation5 + $0x88] sm:$0xff]  ;;  %v381_v59 = vld [vmem:[#allocation5 + $0x100] sm:$0xff]  ;;  %v297_v61 = vsel %vm296_vm0, %v294_v51, %v295_v52  ;;  %v298_v10 = vsel %vm296_vm0, %v295_v52, %v294_v51 }
  0x41   : > { %342 = vmatpush.msra.mxu0 %v325_v25  ;;  %478 = vmatpush.msra.mxu3 %v471_v46  ;;  %v302_v57 = vld [vmem:[#allocation5 + $0x8] sm:$0xff]  ;;  %v469_v58 = vld [vmem:[#allocation7 + $0xd0] sm:$0xff]  ;;  %v318_v60 = vld [vmem:[#allocation5 + $0x80] sm:$0xff]  ;;  %v291_v63 = vsel %vm289_vm1, %v288_v56, %v287_v55  ;;  %v290_v12 = vsel %vm289_vm1, %v287_v55, %v288_v56 }
  0x42   : > { %365 = vmatpush.msra.mxu1 %v308_v26  ;;  %406 = vmatpush.msra.mxu2 %v387_v27  ;;  %v301_v62 = vld [vmem:[#allocation5] sm:$0xff]  ;;  %v468_v0 = vld [vmem:[#allocation7 + $0xc8] sm:$0xff]  ;;  %v457_v1 = vld [vmem:[#allocation7 + $0x78] sm:$0xff] }
  0x43   : > { %343 = vmatpush.msra.mxu0 %v324_v28  ;;  %479 = vmatpush.msra.mxu3 %v470_v54  ;;  %v537_v2 = vld [vmem:[#allocation7 + $0x178] sm:$0xff]  ;;  %v467_v4 = vld [vmem:[#allocation7 + $0xc0] sm:$0xff]  ;;  %v456_v5 = vld [vmem:[#allocation7 + $0x70] sm:$0xff] }
  0x44   : > { %366 = vmatpush.msra.mxu1 %v307_v29  ;;  %407 = vmatpush.msra.mxu2 %v386_v32  ;;  %v536_v6 = vld [vmem:[#allocation7 + $0x170] sm:$0xff]  ;;  %v466_v7 = vld [vmem:[#allocation7 + $0xb8] sm:$0xff]  ;;  %v455_v8 = vld [vmem:[#allocation7 + $0x68] sm:$0xff] }
  0x45   : > { %344 = vmatpush.msra.mxu0 %v323_v33  ;;  %480 = vmatpush.msra.mxu3 %v469_v58  ;;  %v535_v9 = vld [vmem:[#allocation7 + $0x168] sm:$0xff]  ;;  %v465_v11 = vld [vmem:[#allocation7 + $0xb0] sm:$0xff]  ;;  %v454_v14 = vld [vmem:[#allocation7 + $0x60] sm:$0xff] }
  0x46   : > { %367 = vmatpush.msra.mxu1 %v306_v34  ;;  %408 = vmatpush.msra.mxu2 %v385_v36  ;;  %v464_v13 = vld [vmem:[#allocation7 + $0xa8] sm:$0xff]  ;;  %v534_v15 = vld [vmem:[#allocation7 + $0x160] sm:$0xff]  ;;  %v453_v17 = vld [vmem:[#allocation7 + $0x58] sm:$0xff] }
  0x47   : > { %345 = vmatpush.msra.mxu0 %v322_v37  ;;  %481 = vmatpush.msra.mxu3 %v468_v0  ;;  %v463_v16 = vld [vmem:[#allocation7 + $0xa0] sm:$0xff]  ;;  %v533_v18 = vld [vmem:[#allocation7 + $0x158] sm:$0xff]  ;;  %v452_v20 = vld [vmem:[#allocation7 + $0x50] sm:$0xff] }
  0x48   : > { %368 = vmatpush.msra.mxu1 %v305_v39  ;;  %409 = vmatpush.msra.mxu2 %v384_v38  ;;  %v462_v19 = vld [vmem:[#allocation7 + $0x98] sm:$0xff]  ;;  %v532_v21 = vld [vmem:[#allocation7 + $0x150] sm:$0xff]  ;;  %v460_v23 = vld [vmem:[#allocation7 + $0x88] sm:$0xff] }
  0x49   : > { %346 = vmatpush.msra.mxu0 %v321_v42  ;;  %482 = vmatpush.msra.mxu3 %v467_v4  ;;  %v461_v22 = vld [vmem:[#allocation7 + $0x90] sm:$0xff]  ;;  %v459_v24 = vld [vmem:[#allocation7 + $0x80] sm:$0xff]  ;;  %v451_v25 = vld [vmem:[#allocation7 + $0x48] sm:$0xff] }
  0x4a   : > { %369 = vmatpush.msra.mxu1 %v304_v45  ;;  %410 = vmatpush.msra.mxu2 %v383_v47  ;;  %v531_v26 = vld [vmem:[#allocation7 + $0x148] sm:$0xff]  ;;  %v450_v27 = vld [vmem:[#allocation7 + $0x40] sm:$0xff]  ;;  %v449_v29 = vld [vmem:[#allocation7 + $0x38] sm:$0xff] }
  0x4b   : > { %347 = vmatpush.msra.mxu0 %v320_v49  ;;  %483 = vmatpush.msra.mxu3 %v466_v7  ;;  %v530_v28 = vld [vmem:[#allocation7 + $0x140] sm:$0xff]  ;;  %v529_v30 = vld [vmem:[#allocation7 + $0x138] sm:$0xff]  ;;  %v448_v31 = vld [vmem:[#allocation7 + $0x30] sm:$0xff] }
  0x4c   : > { %370 = vmatpush.msra.mxu1 %v303_v50  ;;  %411 = vmatpush.msra.mxu2 %v382_v48  ;;  %v528_v32 = vld [vmem:[#allocation7 + $0x130] sm:$0xff]  ;;  %v447_v33 = vld [vmem:[#allocation7 + $0x28] sm:$0xff]  ;;  %v446_v35 = vld [vmem:[#allocation7 + $0x20] sm:$0xff] }
  0x4d   : > { %348 = vmatpush.msra.mxu0 %v319_v53  ;;  %484 = vmatpush.msra.mxu3 %v465_v11  ;;  %v527_v34 = vld [vmem:[#allocation7 + $0x128] sm:$0xff]  ;;  %v526_v36 = vld [vmem:[#allocation7 + $0x120] sm:$0xff]  ;;  %v445_v37 = vld [vmem:[#allocation7 + $0x18] sm:$0xff] }
  0x4e   : > { %371 = vmatpush.msra.mxu1 %v302_v57  ;;  %412 = vmatpush.msra.mxu2 %v381_v59  ;;  %v525_v38 = vld [vmem:[#allocation7 + $0x118] sm:$0xff]  ;;  %v444_v39 = vld [vmem:[#allocation7 + $0x10] sm:$0xff]  ;;  %v443_v42 = vld [vmem:[#allocation7 + $0x8] sm:$0xff] }
  0x4f   : > { %349 = vmatpush.msra.mxu0 %v318_v60  ;;  %413 = vmatmul.f32.vlgmr.msra.gmra.mxu2 %v297_v61  ;;  %v524_v41 = vld [vmem:[#allocation7 + $0x110] sm:$0xff]  ;;  %v523_v45 = vld [vmem:[#allocation7 + $0x108] sm:$0xff]  ;;  %v442_v46 = vld [vmem:[#allocation7] sm:$0xff] }
  0x50   : > { %372 = vmatpush.msra.mxu1 %v301_v62  ;;  %350 = vmatmul.f32.vlgmr.msra.gmra.mxu0 %v1134_v43  ;;  %v522_v47 = vld [vmem:[#allocation7 + $0x100] sm:$0xff] }
  0x51   : > { %696 = vmatmul.msk.f32.vlgmr.msra.gmra.mxu1 %vm283_vm2, %v291_v63  ;;  %498 = vmatpush.msrb.mxu0 %v457_v1  ;;  %v810_v51 = vld [vmem:[%s1221_s2] ss:$0 sm:$0xff] }
  0x52   : > { %707 = vmatpush.msrb.mxu2 %v457_v1  ;;  %538 = vmatpush.msrb.mxu1 %v537_v2  ;;  %v811_v11 = vld [vmem:[%s1223_s4] ss:$0 sm:$0xff] }
  0x53   : > { %499 = vmatpush.msrb.mxu0 %v456_v5  ;;  %485 = vmatpush.msra.mxu3 %v464_v13 }
  0x54   : > { %708 = vmatpush.msrb.mxu2 %v456_v5  ;;  %539 = vmatpush.msrb.mxu1 %v536_v6 }
  0x55   : > { %500 = vmatpush.msrb.mxu0 %v455_v8  ;;  %486 = vmatpush.msra.mxu3 %v463_v16 }
  0x56   : > { %709 = vmatpush.msrb.mxu2 %v455_v8  ;;  %540 = vmatpush.msrb.mxu1 %v535_v9 }
  0x57   : > { %697 = vmatmul.msk.f32.gmra.mxu2 %vm286_vm3, %v298_v10  ;;  %501 = vmatpush.msrb.mxu0 %v454_v14 }
  0x58   : > { %353 = vmatmul.f32.gmra.mxu0 %v1137_v44  ;;  %710 = vmatpush.msrb.mxu2 %v454_v14 }
  0x59   : > { %376 = vmatmul.f32.gmra.mxu1 %v290_v12  ;;  %502 = vmatpush.msrb.mxu0 %v453_v17 }
  0x5a   : > { %541 = vmatpush.msrb.mxu1 %v534_v15  ;;  %711 = vmatpush.msrb.mxu2 %v453_v17 }
  0x5b   : > { %487 = vmatpush.msra.mxu3 %v462_v19  ;;  %503 = vmatpush.msrb.mxu0 %v452_v20 }
  0x5c   : > { %542 = vmatpush.msrb.mxu1 %v533_v18  ;;  %712 = vmatpush.msrb.mxu2 %v452_v20 }
  0x5d   : > { %488 = vmatpush.msra.mxu3 %v461_v22  ;;  %504 = vmatpush.msrb.mxu0 %v451_v25 }
  0x5e   : > { %543 = vmatpush.msrb.mxu1 %v532_v21  ;;  %713 = vmatpush.msrb.mxu2 %v451_v25 }
  0x5f   : > { %489 = vmatpush.msra.mxu3 %v460_v23  ;;  %505 = vmatpush.msrb.mxu0 %v450_v27 }
  0x60   : > { %544 = vmatpush.msrb.mxu1 %v531_v26  ;;  %714 = vmatpush.msrb.mxu2 %v450_v27 }
  0x61   : > { %490 = vmatpush.msra.mxu3 %v459_v24  ;;  %506 = vmatpush.msrb.mxu0 %v449_v29 }
  0x62   : > { %545 = vmatpush.msrb.mxu1 %v530_v28  ;;  %715 = vmatpush.msrb.mxu2 %v449_v29 }
  0x63   : > { %723 = vmatpush.msrb.mxu3 %v537_v2  ;;  %507 = vmatpush.msrb.mxu0 %v448_v31 }
  0x64   : > { %546 = vmatpush.msrb.mxu1 %v529_v30  ;;  %716 = vmatpush.msrb.mxu2 %v448_v31 }
  0x65   : > { %724 = vmatpush.msrb.mxu3 %v536_v6  ;;  %508 = vmatpush.msrb.mxu0 %v447_v33 }
  0x66   : > { %547 = vmatpush.msrb.mxu1 %v528_v32  ;;  %717 = vmatpush.msrb.mxu2 %v447_v33 }
  0x67   : > { %725 = vmatpush.msrb.mxu3 %v535_v9  ;;  %509 = vmatpush.msrb.mxu0 %v446_v35 }
  0x68   : > { %548 = vmatpush.msrb.mxu1 %v527_v34  ;;  %718 = vmatpush.msrb.mxu2 %v446_v35 }
  0x69   : > { %726 = vmatpush.msrb.mxu3 %v534_v15  ;;  %510 = vmatpush.msrb.mxu0 %v445_v37 }
  0x6a   : > { %549 = vmatpush.msrb.mxu1 %v526_v36  ;;  %719 = vmatpush.msrb.mxu2 %v445_v37 }
  0x6b   : > { %727 = vmatpush.msrb.mxu3 %v533_v18  ;;  %511 = vmatpush.msrb.mxu0 %v444_v39 }
  0x6c   : > { %550 = vmatpush.msrb.mxu1 %v525_v38  ;;  %720 = vmatpush.msrb.mxu2 %v444_v39 }
  0x6d   : > { %728 = vmatpush.msrb.mxu3 %v532_v21  ;;  %512 = vmatpush.msrb.mxu0 %v443_v42 }
  0x6e   : > { %551 = vmatpush.msrb.mxu1 %v524_v41  ;;  %721 = vmatpush.msrb.mxu2 %v443_v42 }
  0x6f   : > { %729 = vmatpush.msrb.mxu3 %v531_v26  ;;  %513 = vmatpush.msrb.mxu0 %v442_v46 }
  0x70   : > { %552 = vmatpush.msrb.mxu1 %v523_v45  ;;  %722 = vmatpush.msrb.mxu2 %v442_v46 }
  0x71   : > { %730 = vmatpush.msrb.mxu3 %v530_v28 }
  0x72   : > { %553 = vmatpush.msrb.mxu1 %v522_v47 }
  0x73   : > { %731 = vmatpush.msrb.mxu3 %v529_v30 }
  0x75   : > { %732 = vmatpush.msrb.mxu3 %v528_v32 }
  0x77   : > { %733 = vmatpush.msrb.mxu3 %v527_v34 }
  0x79   : > { %734 = vmatpush.msrb.mxu3 %v526_v36 }
  0x7b   : > { %735 = vmatpush.msrb.mxu3 %v525_v38 }
  0x7d   : > { %736 = vmatpush.msrb.mxu3 %v524_v41 }
  0x7f   : > { %737 = vmatpush.msrb.mxu3 %v523_v45 }
  0x81   : > { %738 = vmatpush.msrb.mxu3 %v522_v47 }
  0xcd   : > { %v351_v48 = vpop.f32.mrf.mxu0 }
  0xce   : > { %v374_v49 = vpop.f32.mrf.mxu1 }
  0xcf   : > { %v375_v50 = vadd.f32 %v374_v49, %v351_v48 }
  0xd2   : > { %v414_v52 = vpop.f32.mrf.mxu2 }
  0xd3   : > { %v420_v53 = vadd.f32 %v414_v52, %v375_v50 }
  0xd5   : > { %v426_v54 = vadd.f32 %v810_v51, %v420_v53  ;;  %v354_v55 = vpop.f32.mrf.mxu0 }
  0xd6   : > { %v377_v56 = vpop.f32.mrf.mxu1 }
  0xd7   : > { %v428_v57 = vmax.f32 %v426_v54, 0.0  ;;  %v378_v58 = vadd.f32 %v377_v56, %v354_v55 }
  0xd9   : > { %491 = vmatmul.f32.vlgmr.msra.gmra.mxu3 %v428_v57  ;;  %v430_v63 = vrot.slane %v428_v57, 7  ;;  %v436_v1 = vrot.slane %v428_v57, 1 }
  0xda   : > { %v417_v59 = vpop.f32.mrf.mxu2 }
  0xdb   : > { %v421_v60 = vadd.f32 %v417_v59, %v378_v58 }
  0xdd   : > { %v427_v61 = vadd.f32 %v810_v51, %v421_v60 }
  0xdf   : > { %v429_v62 = vmax.f32 %v427_v61, 0.0 }
  0xe1   : > { %v431_v0 = vrot.slane %v429_v62, 7  ;;  %494 = vmatmul.f32.gmra.mxu3 %v429_v62  ;;  %v437_v2 = vrot.slane %v429_v62, 1 }
  0xe3   : > { %v433_v4 = vsel %vm289_vm1, %v431_v0, %v430_v63  ;;  %v432_v5 = vsel %vm289_vm1, %v430_v63, %v431_v0  ;;  %v438_v6 = vsel %vm296_vm0, %v436_v1, %v437_v2  ;;  %v439_v7 = vsel %vm296_vm0, %v437_v2, %v436_v1 }
  0xe4   : > { %698 = vmatmul.msk.f32.vlgmr.msrb.gmra.mxu0 %vm283_vm2, %v433_v4  ;;  %517 = vmatmul.f32.vlgmr.msrb.gmra.mxu2 %v432_v5 }
  0xe5   : > { %554 = vmatmul.f32.vlgmr.msrb.gmra.mxu1 %v438_v6 }
  0xe9   : > { %699 = vmatmul.msk.f32.vlgmr.msrb.gmra.mxu3 %vm286_vm3, %v439_v7 }
 0x15c   : > { %v492_v8 = vpop.f32.mrf.mxu3 }
 0x161   : > { %v515_v9 = vpop.f32.mrf.mxu0 }
 0x162   : > { %v516_v10 = vadd.f32 %v515_v9, %v492_v8  ;;  %v555_v12 = vpop.f32.mrf.mxu1 }
 0x164   : > { %v561_v13 = vadd.f32 %v555_v12, %v516_v10  ;;  %v495_v14 = vpop.f32.mrf.mxu3 }
 0x166   : > { %v567_v15 = vadd.f32 %v811_v11, %v561_v13 }
 0x167   : > { %v518_v17 = vpop.f32.mrf.mxu2 }
 0x168   : > { %v569_v16 = vadd.f32 %v567_v15, %v1134_v43  ;;  %v519_v18 = vadd.f32 %v518_v17, %v495_v14 }
 0x16a   : > { %v571_v40 = vmax.f32 %v569_v16, 0.0 }
 0x16c   : > { %573 = vst [vmem:[%s277_s13] sm:$0xff] %v571_v40  ;;  %v558_v3 = vpop.f32.mrf.mxu3 }
 0x16d   : > { %v562_v19 = vadd.f32 %v558_v3, %v519_v18 }
 0x16f   : > { %v568_v20 = vadd.f32 %v811_v11, %v562_v19 }
 0x171   : > { %v570_v43 = vadd.f32 %v568_v20, %v1137_v44 }
 0x173   : > { %v572_v21 = vmax.f32 %v570_v43, 0.0 }
 0x175   : > { %574 = vst [vmem:[%s277_s13 + $0x8] sm:$0xff] %v572_v21 }
 0x176   : > { %929 = shalt.err (!%p926_p10)
}
 0x177   : > { %s978_s8 = smov 128   ;;  %s979_s9 = smov 8  }
 0x178   : > { %749 = dma.vmem_to_hbm [thread:$0]  (%p1082_p3), %s589_s6, 256, %s591_s7, %s576_s22, %s978_s8, %s978_s8, %s979_s9  }
 0x179 PF: > { %s605_s12 = sand.u32 1, %s960_s18   ;;  %p1232_p12 = scmp.ge.s32.totalorder %s972_s21, 2 }
 0x17a   : > { %s606_s13 = scalar_lea.sflag [#allocation4], %s605_s12 }
 0x17b   : > { %p763_p13 = pnand %p1232_p12, %p1045_p6 }
 0x17d   : > { %p764_p0 = pneg %p763_p13 }
 0x17f   : > { %955 = dma.done.wait (%p764_p0), %s606_s13, 256  }
 0x180   : > { %957 = vsyncadd (%p764_p0), %s606_s13, 4294967040  ;;  %p19_p5 = scmp.ge.s32.totalorder %s1072_s14, 4   ;;  %s1233_s18 = smov %s964_s19 }
 0x181   : > { %s1234_s19 = smov %s968_s20  ;;  %s1235_s20 = smov %s1088_s23 }
 0x182   : > { %s1236_s21 = smov %s1072_s14  ;;  %21 = sbr.rel (!%p19_p5) target bundleno = 6 (0x6), region = 97 }
 0x187   :  { %612 = vsyncpa [#allocation3], 1 }
 0x188   :  { %614 = vsyncpa [#allocation3 + $0x1], 1 }
 0x189   :  { %615 = vsyncpa [#allocation6], 1 }
 0x18a   :  { %616 = vsyncpa [#allocation4], 1 }
 0x18b   :  { %618 = vsyncpa [#allocation4 + $0x1], 1 }

</bundles_post_ra>
